<compile_context>
chip_gen: v5e
topology: v5e:2x2
jax: 0.10.0
libtpu: 0.0.40
codegen_flags: <defaults>
</compile_context>

<pallas_src>
import jax
import jax.numpy as jnp
from jax.experimental import pallas as pl
from jax.experimental.pallas import tpu as pltpu

# ---- model config (mirrors the PyTorch script) -----------------------------
EMBEDDING_SIZE = 2
FILTER_SIZES = (2, 2, 2)          # fused block-weight trick assumes all equal
NUM_CLASSES = 2
NUM_FILTERS = 3
SEQUENCE_LENGTH = 3
VOCAB_SIZE = 16
NUM_FILTERS_TOTAL = NUM_FILTERS * len(FILTER_SIZES)     # 9

FS = FILTER_SIZES[0]
N_POS = SEQUENCE_LENGTH - FS + 1          # 2 conv output positions per branch
K = SEQUENCE_LENGTH * EMBEDDING_SIZE      # 6 flattened embedding features/row
K_PAD = 8                                 # features padded to one sublane group
ONES_ROW = K                              # constant-1 feature row (folds conv bias)
G_PAD = 16                                # 9 conv channels padded to 2x8 sublanes
LANE = 128


def textcnn_kernel(xT_ref, wblock_ref, linwT_ref, linb_ref, out_ref):
    """xT_ref:     (K_PAD, Bt)      embeddings, batch on lanes, row 6 == 1.0
       wblock_ref: (2*G_PAD, K_PAD) both conv positions + folded conv bias
       linwT_ref:  (C, G_PAD)       head weight (zero cols for padded channels)
       linb_ref:   (C, 1)           head bias
       out_ref:    (C, Bt)          logits, batch on lanes."""
    # One MXU push computes both positions of all 3 branches (+ conv bias).
    acc = jnp.dot(wblock_ref[...], xT_ref[...],
                  preferred_element_type=jnp.float32)               # (32, Bt)
    # MaxPool over the 2 positions = max of the two aligned 16-row halves,
    # then a single ReLU (bias already folded in; max/ReLU commute with it).
    pooled = jnp.maximum(jnp.maximum(acc[:G_PAD, :], acc[G_PAD:, :]), 0.0)
    # Linear head: (C, 16) @ (16, Bt) + (C, 1)
    out_ref[...] = (jnp.dot(linwT_ref[...], pooled,
                            preferred_element_type=jnp.float32)
                    + linb_ref[...])


def _round_up(x, m):
    return ((x + m - 1) // m) * m


def textcnn_forward(x_idx, W_emb, conv_w, conv_b, lin_w, lin_b):
    # NOTE: fused block-weight trick requires all filter sizes equal ((2,2,2)).
    assert all(f == FS for f in FILTER_SIZES), "fused kernel assumes equal filter sizes"

    B = x_idx.shape[0]

    # ---- wrapper-side layout plumbing (runs once in XLA, not in the kernel) ----
    # embedding gather (glue, outside the kernel), flatten, batch -> lanes
    emb = jnp.take(W_emb, x_idx, axis=0).astype(jnp.float32)        # (B, S, E)
    x_flat = emb.reshape(B, K)                                      # (B, 6)

    b_tile = min(512, _round_up(max(B, 1), LANE))                   # lane tile
    b_pad = _round_up(max(B, 1), b_tile)

    xT = jnp.zeros((K_PAD, b_pad), jnp.float32)
    xT = xT.at[:K, :B].set(x_flat.T)
    xT = xT.at[ONES_ROW, :].set(1.0)        # constant feature -> folded conv bias

    # Block conv weight: row-group p (16 rows) = conv position p; rows 0..8 of
    # each group are the 9 channels in branch-major/filter-minor (torch.cat)
    # order, reading feature columns p*E .. p*E + fs*E, plus the bias column.
    w_chan = conv_w.reshape(NUM_FILTERS_TOTAL, FS * EMBEDDING_SIZE)  # (9, 4)
    b_chan = conv_b.reshape(NUM_FILTERS_TOTAL)                       # (9,)
    wblock = jnp.zeros((N_POS * G_PAD, K_PAD), jnp.float32)
    for p in range(N_POS):
        r0, c0 = p * G_PAD, p * EMBEDDING_SIZE
        wblock = wblock.at[r0:r0 + NUM_FILTERS_TOTAL,
                           c0:c0 + FS * EMBEDDING_SIZE].set(w_chan)
        wblock = wblock.at[r0:r0 + NUM_FILTERS_TOTAL, ONES_ROW].set(b_chan)

    linwT = jnp.zeros((NUM_CLASSES, G_PAD), jnp.float32)
    linwT = linwT.at[:, :NUM_FILTERS_TOTAL].set(lin_w.T)             # (2, 16)
    linb_col = lin_b.reshape(NUM_CLASSES, 1)                         # (2, 1)

    grid = (b_pad // b_tile,)
    out_T = pl.pallas_call(
        textcnn_kernel,
        out_shape=jax.ShapeDtypeStruct((NUM_CLASSES, b_pad), jnp.float32),
        grid=grid,
        in_specs=[
            pl.BlockSpec((K_PAD, b_tile), lambda i: (0, i)),          # xT tile
            pl.BlockSpec((N_POS * G_PAD, K_PAD), lambda i: (0, 0)),   # conv block W
            pl.BlockSpec((NUM_CLASSES, G_PAD), lambda i: (0, 0)),     # head W^T
            pl.BlockSpec((NUM_CLASSES, 1), lambda i: (0, 0)),         # head bias
        ],
        out_specs=pl.BlockSpec((NUM_CLASSES, b_tile), lambda i: (0, i)),
        compiler_params=pltpu.CompilerParams(
            dimension_semantics=("parallel",)),                       # megacore on v7x
    )(xT, wblock, linwT, linb_col)

    return out_T[:, :B].T                                             # (B, C)


def textcnn_reference(x_idx, W_emb, conv_w, conv_b, lin_w, lin_b):
    """Pure-JAX reference of the PyTorch forward (for a correctness check)."""
    emb = jnp.take(W_emb, x_idx, axis=0)                             # (B, S, E)
    feats = []
    for br, fs in enumerate(FILTER_SIZES):
        wf, bf = conv_w[br], conv_b[br, 0]                           # (O,fs,E), (O,)
        cols = []
        for i in range(SEQUENCE_LENGTH - fs + 1):
            patch = emb[:, i:i + fs, :]
            cols.append(jnp.einsum('bfe,ofe->bo', patch, wf) + bf)
        h = jax.nn.relu(jnp.stack(cols, axis=1))                     # (B, n_pos, O)
        feats.append(jnp.max(h, axis=1))                             # (B, O)
    h_pool = jnp.concatenate(feats, axis=1)                          # (B, F_total)
    return h_pool @ lin_w + lin_b[0]


if __name__ == "__main__":
    key = jax.random.PRNGKey(0)
    k_x, k_emb, k_cw, k_cb, k_lw = jax.random.split(key, 5)

    batch = 8   # small example batch (wrapper pads lanes to the 128-wide tile)
    x_idx = jax.random.randint(k_x, (batch, SEQUENCE_LENGTH), 0, VOCAB_SIZE,
                               dtype=jnp.int32)

    # Parameters (deterministic, uniform(-1, 1) like the PyTorch init)
    W_emb = jax.random.uniform(k_emb, (VOCAB_SIZE, EMBEDDING_SIZE),
                               minval=-1.0, maxval=1.0, dtype=jnp.float32)
    conv_w = jax.random.uniform(
        k_cw, (len(FILTER_SIZES), NUM_FILTERS, FS, EMBEDDING_SIZE),
        minval=-1.0, maxval=1.0, dtype=jnp.float32)
    conv_b = jax.random.uniform(k_cb, (len(FILTER_SIZES), 1, NUM_FILTERS),
                                minval=-1.0, maxval=1.0, dtype=jnp.float32)
    lin_w = jax.random.uniform(k_lw, (NUM_FILTERS_TOTAL, NUM_CLASSES),
                               minval=-1.0, maxval=1.0, dtype=jnp.float32)
    lin_b = 0.1 * jnp.ones((1, NUM_CLASSES), dtype=jnp.float32)

    out = textcnn_forward(x_idx, W_emb, conv_w, conv_b, lin_w, lin_b)
    out = jax.block_until_ready(out)

    ref = textcnn_reference(x_idx, W_emb, conv_w, conv_b, lin_w, lin_b)
    assert out.shape == (batch, NUM_CLASSES)
    assert jnp.allclose(out, ref, atol=1e-5, rtol=1e-5), "mismatch vs reference"

    print("KERNEL_OK")
</pallas_src>

<mosaic_0001>
module attributes {stable_mosaic.version = 11 : i64} {
  func.func @textcnn_kernel(%arg0: i32, %arg1: memref<8x128xf32, #tpu.memory_space<vmem>>, %arg2: memref<32x8xf32, #tpu.memory_space<vmem>>, %arg3: memref<2x16xf32, #tpu.memory_space<vmem>>, %arg4: memref<2x1xf32, #tpu.memory_space<vmem>>, %arg5: memref<2x128xf32, #tpu.memory_space<vmem>>) attributes {dimension_semantics = [#tpu.dimension_semantics<parallel>], iteration_bounds = array<i64: 1>, scalar_prefetch = 0 : i64, scratch_operands = 0 : i64, tpu.core_type = #tpu.core_type<tc>, window_params = [{transform_indices = @transform_0, window_bounds = array<i64: 8, 128>}, {pipeline_mode = #tpu.pipeline_mode<synchronous>, transform_indices = @transform_1, window_bounds = array<i64: 32, 8>}, {pipeline_mode = #tpu.pipeline_mode<synchronous>, transform_indices = @transform_2, window_bounds = array<i64: 2, 16>}, {pipeline_mode = #tpu.pipeline_mode<synchronous>, transform_indices = @transform_3, window_bounds = array<i64: 2, 1>}, {transform_indices = @transform_4, window_bounds = array<i64: 2, 128>}]} {
    %c0 = arith.constant 0 : index
    %c0_0 = arith.constant 0 : index
    %0 = vector.load %arg2[%c0, %c0_0] : memref<32x8xf32, #tpu.memory_space<vmem>>, vector<32x8xf32>
    %c0_1 = arith.constant 0 : index
    %c0_2 = arith.constant 0 : index
    %1 = vector.load %arg1[%c0_1, %c0_2] : memref<8x128xf32, #tpu.memory_space<vmem>>, vector<8x128xf32>
    %cst = arith.constant dense<0.000000e+00> : vector<32x128xf32>
    %2 = tpu.matmul %0, %1, %cst {dimension_numbers = #tpu.dot_dimension_numbers<[1], [0], [0], [1], [0, 0, 1, 1], [], []>} : vector<32x8xf32>, vector<8x128xf32>, vector<32x128xf32> -> vector<32x128xf32>
    %3 = vector.extract_strided_slice %2 {offsets = [0, 0], sizes = [16, 128], strides = [1, 1]} : vector<32x128xf32> to vector<16x128xf32>
    %4 = vector.extract_strided_slice %2 {offsets = [16, 0], sizes = [16, 128], strides = [1, 1]} : vector<32x128xf32> to vector<16x128xf32>
    %5 = arith.maximumf %3, %4 : vector<16x128xf32>
    %cst_3 = arith.constant 0.000000e+00 : f32
    %6 = vector.broadcast %cst_3 : f32 to vector<16x128xf32>
    %7 = arith.maximumf %5, %6 : vector<16x128xf32>
    %c0_4 = arith.constant 0 : index
    %c0_5 = arith.constant 0 : index
    %8 = vector.load %arg3[%c0_4, %c0_5] : memref<2x16xf32, #tpu.memory_space<vmem>>, vector<2x16xf32>
    %cst_6 = arith.constant dense<0.000000e+00> : vector<2x128xf32>
    %9 = tpu.matmul %8, %7, %cst_6 {dimension_numbers = #tpu.dot_dimension_numbers<[1], [0], [0], [1], [0, 0, 1, 1], [], []>} : vector<2x16xf32>, vector<16x128xf32>, vector<2x128xf32> -> vector<2x128xf32>
    %c0_7 = arith.constant 0 : index
    %c0_8 = arith.constant 0 : index
    %10 = vector.load %arg4[%c0_7, %c0_8] : memref<2x1xf32, #tpu.memory_space<vmem>>, vector<2x1xf32>
    %11 = vector.broadcast %10 : vector<2x1xf32> to vector<2x128xf32>
    %12 = arith.addf %9, %11 : vector<2x128xf32>
    %c0_9 = arith.constant 0 : index
    %c0_10 = arith.constant 0 : index
    %13 = vector.load %arg5[%c0_9, %c0_10] : memref<2x128xf32, #tpu.memory_space<vmem>>, vector<2x128xf32>
    tpu.vector_store %arg5[%c0_9, %c0_10], %12 {strides = array<i32>} : memref<2x128xf32, #tpu.memory_space<vmem>>, vector<2x128xf32>,
    return
  }
  func.func @transform_0(%arg0: i32) -> (i32, i32) {
    %c0_i32 = arith.constant 0 : i32
    %c0_i32_0 = arith.constant 0 : i32
    return %c0_i32, %arg0 : i32, i32
  }
  func.func @transform_1(%arg0: i32) -> (i32, i32) {
    %c0_i32 = arith.constant 0 : i32
    %c0_i32_0 = arith.constant 0 : i32
    %c0_i32_1 = arith.constant 0 : i32
    return %c0_i32, %c0_i32_0 : i32, i32
  }
  func.func @transform_2(%arg0: i32) -> (i32, i32) {
    %c0_i32 = arith.constant 0 : i32
    %c0_i32_0 = arith.constant 0 : i32
    %c0_i32_1 = arith.constant 0 : i32
    return %c0_i32, %c0_i32_0 : i32, i32
  }
  func.func @transform_3(%arg0: i32) -> (i32, i32) {
    %c0_i32 = arith.constant 0 : i32
    %c0_i32_0 = arith.constant 0 : i32
    %c0_i32_1 = arith.constant 0 : i32
    return %c0_i32, %c0_i32_0 : i32, i32
  }
  func.func @transform_4(%arg0: i32) -> (i32, i32) {
    %c0_i32 = arith.constant 0 : i32
    %c0_i32_0 = arith.constant 0 : i32
    return %c0_i32, %arg0 : i32, i32
  }
}

</mosaic_0001>

<bundles_post_ra>
// kernel: tpu_custom_call.1
= control target key start
LH: loop header
LB: loop body
LE: loop exit
PB: predicated region body
PF: predicated region fallthrough
CT: control target
= control target key end

     0   :  { %vm23_vm0 = vcmask 64512   ;;  %s204_s0 = inlined_call_operand.vmem [shape: f32[8,128], index: 0, kind: input, shape index: {}]   ;;  %s205_s1 = inlined_call_operand.vmem [shape: f32[32,8], index: 1, kind: input, shape index: {}]   ;;  %s206_s2 = inlined_call_operand.vmem [shape: f32[2,16], index: 2, kind: input, shape index: {}]   ;;  %s207_s3 = inlined_call_operand.vmem [shape: f32[2,1], index: 3, kind: input, shape index: {}]   ;;  %s208_s4 = inlined_call_operand.hbm [shape: f32[2,128], index: 4, kind: output, shape index: {}]  }
   0x1   :  { %v22_v0 = vld [vmem:[%s204_s0] sm:$0xff]  ;;  %v19_v1 = vld [vmem:[%s205_s1 + $0x8] sm:$0xff]  ;;  %v21_v2 = vld [vmem:[%s205_s1 + $0x18] sm:$0xff] }
   0x2   :  { %122 = vmatpush.msra.mxu2 %v22_v0  ;;  %123 = vmatpush.msra.mxu3 %v22_v0  ;;  %v18_v3 = vld [vmem:[%s205_s1] sm:$0xff] }
   0x3   :  { %9 = vsyncpa [#allocation3], 0  ;;  %118 = vmatmul.msk.f32.vlgmr.msra.gmra.mxu2 %vm23_vm0, %v19_v1  ;;  %120 = vmatmul.msk.f32.vlgmr.msra.gmra.mxu3 %vm23_vm0, %v21_v2  ;;  %v20_v4 = vld [vmem:[%s205_s1 + $0x10] sm:$0xff]  ;;  %v70_v5 = vld [vmem:[%s207_s3] sm:$0x3]  ;;  %v153_v6 = vmov 0  }
   0x4   :  { %51 = vmatpush.msra.mxu0 %v22_v0  ;;  %126 = vset.pattern.permute.xlu0 %v153_v6  ;;  %v69_v15 = vld [vmem:[%s206_s2] sm:$0x3]  ;;  %vm76_vm1 = vcmask 130048   ;;  %s154_s1 = smov [#allocation2]   ;;  %s108_s30 = sshll.u32 %s208_s4, 4  ;;  %s109_s30 = int_to_ptr.hbm [resolvable:$true] %s108_s30 }
   0x5   :  { %117 = vmatmul.msk.f32.vlgmr.msra.gmra.mxu0 %vm23_vm0, %v18_v3  ;;  %73 = vperm.xlu0 %126, %v70_v5   ;;  %s106_s3 = sshll.u32 %s154_s1, 4  ;;  %s107_s3 = int_to_ptr.vmem [resolvable:$true] %s106_s3 }
   0xb   :  { %119 = vmatmul.msk.f32.gmra.mxu2 %vm23_vm0, %v20_v4 }
  0x77   :  { %v74_v16 = vpop.permute.xlu0 %73 }
  0x82   :  { %v53_v11 = vpop.f32.mrf.mxu0 }
  0x86   :  { %v56_v7 = vpop.f32.mrf.mxu2  ;;  %v62_v8 = vpop.f32.mrf.mxu3 }
  0x87   :  { %v66_v9 = vmax.f32 %v56_v7, %v62_v8 }
  0x89   :  { %v68_v10 = vmax.f32 %v66_v9, 0.0 }
  0x8b   :  { %94 = vmatpush.msra.mxu1 %v68_v10 }
  0x8e   :  { %v59_v12 = vpop.f32.mrf.mxu2 }
  0x8f   :  { %v65_v13 = vmax.f32 %v53_v11, %v59_v12 }
  0x91   :  { %v67_v14 = vmax.f32 %v65_v13, 0.0 }
  0x93   :  { %95 = vmatpush.msra.mxu1 %v67_v14 }
  0x94   :  { %121 = vmatmul.msk.f32.vlgmr.msra.gmra.mxu1 %vm76_vm1, %v69_v15 }
 0x111   :  { %v97_v17 = vpop.f32.mrf.mxu1 }
 0x112   :  { %v98_v18 = vadd.f32 %v97_v17, %v74_v16 }
 0x114   :  { %100 = vst [vmem:[#allocation2] sm:$0x3] %v98_v18 }
 0x115   :  { %111 = dma.vmem_to_hbm [thread:$0]  %s107_s3, 32, %s109_s30, [#allocation3]  }
 0x116   :  { %151 = dma.done.wait [#allocation3], 32  }
 0x117   :  { %152 = vsyncadd [#allocation3], 4294967264 }
 0x118   :  { %116 = vsyncpa [#allocation3], 1 }

</bundles_post_ra>
